<compile_context>
chip_gen: v5e
topology: v5e:2x2
jax: 0.10.0
libtpu: 0.0.40
codegen_flags: <defaults>
</compile_context>

<pallas_src>
import functools

import jax
import jax.numpy as jnp
from jax.experimental import pallas as pl
from jax.experimental.pallas import tpu as pltpu

BN_EPS = 1e-5
LANE = 128
SUBLANE = 8


def _round_up(v, m):
    return ((v + m - 1) // m) * m


# ----------------------------- Pallas kernels ---------------------------------
def matmul_stats_kernel(p_ref, w_ref, y_ref, sum_ref, sq_ref):
    """One M-tile: conv matmul (bf16 in, f32 acc) + per-channel partial BN stats."""
    # p_ref: [TM, K] bf16, w_ref: [K, O_pad] bf16 -> y: [TM, O_pad] f32 (MXU)
    y = jnp.dot(p_ref[...], w_ref[...], preferred_element_type=jnp.float32)
    y_ref[...] = y
    s = jnp.sum(y, axis=0, keepdims=True)        # [1, O_pad]
    q = jnp.sum(y * y, axis=0, keepdims=True)    # [1, O_pad]
    # Partial-stat outputs are (1, 8, O_pad) blocks (sublane-aligned); broadcast the row.
    sum_ref[...] = jnp.broadcast_to(s[:, None, :], sum_ref.shape)
    sq_ref[...] = jnp.broadcast_to(q[:, None, :], sq_ref.shape)


def bn_relu_kernel(y_ref, scale_ref, shift_ref, o_ref):
    """One M-tile: y*scale + shift, ReLU. All elementwise math in f32, lane-dense stores."""
    o_ref[...] = jnp.maximum(y_ref[...] * scale_ref[...] + shift_ref[...], 0.0)


# ----------------------------- glue (plain JAX) -------------------------------
def _im2col(x, kh, kw, stride, padding):
    """x: [N, C, H, W] -> patches [N*OH*OW, C*kh*kw] with feature order (c, kh, kw)."""
    N, C, H, W = x.shape
    xp = jnp.pad(x, ((0, 0), (0, 0), (padding, padding), (padding, padding)))
    OH = (H + 2 * padding - kh) // stride + 1
    OW = (W + 2 * padding - kw) // stride + 1
    cols = []
    for i in range(kh):
        for j in range(kw):
            cols.append(xp[:, :, i:i + stride * OH:stride, j:j + stride * OW:stride])
    p = jnp.stack(cols, axis=2)                    # [N, C, KH*KW, OH, OW]
    p = p.transpose(0, 3, 4, 1, 2)                 # [N, OH, OW, C, KH*KW]
    p = p.reshape(N * OH * OW, C * kh * kw)
    return p, OH, OW


@functools.partial(jax.jit, static_argnames=("stride", "padding", "block_m"))
def conv_block_forward(x, weight, gamma, beta, *, stride, padding, block_m=512):
    """x: [N, C, H, W] (NCHW), weight: [O, C, KH, KW] (OIHW, torch layout). Returns NCHW."""
    N, C, H, W = x.shape
    O, _, KH, KW = weight.shape

    patches, OH, OW = _im2col(x, KH, KW, stride, padding)
    M, K = patches.shape

    # Lane-dense output channels; sublane-aligned, zero-padded M tiling.
    O_pad = _round_up(O, LANE)
    TM = _round_up(min(block_m, _round_up(M, SUBLANE)), SUBLANE)
    n_tiles = -(-M // TM)
    M_pad = n_tiles * TM

    # bf16 MXU inputs (f32 accumulation inside the kernel). Zero padding means padded
    # rows / channels contribute exactly 0 to the BN partial sums.
    patches_p = jnp.pad(patches, ((0, M_pad - M), (0, 0))).astype(jnp.bfloat16)
    w2d = weight.reshape(O, K).T                                   # [K, O]
    w2d_p = jnp.pad(w2d, ((0, 0), (0, O_pad - O))).astype(jnp.bfloat16)

    in_bytes = 2  # bf16
    # VMEM budget: double-buffered inputs + outputs for the chosen tile, with headroom.
    vmem_p1 = 2 * (TM * K * in_bytes + K * O_pad * in_bytes
                   + TM * O_pad * 4 + 2 * SUBLANE * O_pad * 4)
    vmem_p1 = int(min(max(2 * vmem_p1, 4 << 20), 30 << 20))
    cost_p1 = pl.CostEstimate(
        flops=2 * M_pad * K * O_pad,
        transcendentals=0,
        bytes_accessed=(M_pad * K * in_bytes + K * O_pad * in_bytes
                        + M_pad * O_pad * 4 + 2 * n_tiles * SUBLANE * O_pad * 4),
    )

    y, psum, psq = pl.pallas_call(
        matmul_stats_kernel,
        out_shape=(
            jax.ShapeDtypeStruct((M_pad, O_pad), jnp.float32),
            jax.ShapeDtypeStruct((n_tiles, SUBLANE, O_pad), jnp.float32),
            jax.ShapeDtypeStruct((n_tiles, SUBLANE, O_pad), jnp.float32),
        ),
        grid=(n_tiles,),
        in_specs=[
            pl.BlockSpec((TM, K), lambda i: (i, 0)),
            pl.BlockSpec((K, O_pad), lambda i: (0, 0)),
        ],
        out_specs=(
            pl.BlockSpec((TM, O_pad), lambda i: (i, 0)),
            pl.BlockSpec((1, SUBLANE, O_pad), lambda i: (i, 0, 0)),
            pl.BlockSpec((1, SUBLANE, O_pad), lambda i: (i, 0, 0)),
        ),
        compiler_params=pltpu.CompilerParams(
            dimension_semantics=("parallel",), vmem_limit_bytes=vmem_p1),
        cost_estimate=cost_p1,
    )(patches_p, w2d_p)

    # Combine partial stats (tiny [O_pad]-sized math). Training-mode biased variance,
    # computed over the true M = N*OH*OW rows (padded rows contributed zeros).
    count = jnp.float32(M)
    mean = jnp.sum(psum[:, 0, :], axis=0) / count
    var = jnp.sum(psq[:, 0, :], axis=0) / count - mean * mean
    gamma_p = jnp.pad(gamma.astype(jnp.float32), (0, O_pad - O))
    beta_p = jnp.pad(beta.astype(jnp.float32), (0, O_pad - O))
    scale_v = gamma_p * jax.lax.rsqrt(var + BN_EPS)
    shift_v = beta_p - mean * scale_v
    scale = scale_v.reshape(1, O_pad)
    shift = shift_v.reshape(1, O_pad)

    vmem_p2 = 2 * (2 * TM * O_pad * 4 + 2 * O_pad * 4)
    vmem_p2 = int(min(max(2 * vmem_p2, 4 << 20), 30 << 20))
    cost_p2 = pl.CostEstimate(
        flops=3 * M_pad * O_pad,
        transcendentals=0,
        bytes_accessed=2 * M_pad * O_pad * 4 + 2 * O_pad * 4,
    )

    out2d = pl.pallas_call(
        bn_relu_kernel,
        out_shape=jax.ShapeDtypeStruct((M_pad, O_pad), jnp.float32),
        grid=(n_tiles,),
        in_specs=[
            pl.BlockSpec((TM, O_pad), lambda i: (i, 0)),
            pl.BlockSpec((1, O_pad), lambda i: (0, 0)),
            pl.BlockSpec((1, O_pad), lambda i: (0, 0)),
        ],
        out_specs=pl.BlockSpec((TM, O_pad), lambda i: (i, 0)),
        compiler_params=pltpu.CompilerParams(
            dimension_semantics=("parallel",), vmem_limit_bytes=vmem_p2),
        cost_estimate=cost_p2,
    )(y, scale, shift)

    # Slice padded rows/channels and restore PyTorch's NCHW layout.
    # TODO(synk): return NHWC (or fold the transpose into the pass-2 out_spec) if the consumer
    #             doesn't require NCHW; this is one extra output-sized HBM round trip.
    return out2d[:M, :O].reshape(N, OH, OW, O).transpose(0, 3, 1, 2)


# ----------------------------- pure-JAX reference -----------------------------
def ref_forward(x, weight, gamma, beta, *, stride, padding):
    # Same bf16 input quantization as the kernel path; f32 accumulation and BN math.
    y = jax.lax.conv_general_dilated(
        x.astype(jnp.bfloat16), weight.astype(jnp.bfloat16),
        window_strides=(stride, stride),
        padding=[(padding, padding), (padding, padding)],
        dimension_numbers=("NCHW", "OIHW", "NCHW"),
        preferred_element_type=jnp.float32,
    )
    mean = jnp.mean(y, axis=(0, 2, 3), keepdims=True)
    var = jnp.mean((y - mean) ** 2, axis=(0, 2, 3), keepdims=True)
    yh = (y - mean) * jax.lax.rsqrt(var + BN_EPS)
    out = yh * gamma.reshape(1, -1, 1, 1) + beta.reshape(1, -1, 1, 1)
    return jnp.maximum(out, 0.0)


if __name__ == "__main__":
    # ConvBlock(in_channels=4, out_channels=8, kernel_size=3, stride=1, padding=1, bias=False)
    in_channels, out_channels, kernel_size, stride, padding = 4, 8, 3, 1, 1
    N, H, W = 2, 16, 16

    key = jax.random.PRNGKey(0)
    kx, kw_, kg, kb = jax.random.split(key, 4)
    x = jax.random.normal(kx, (N, in_channels, H, W), dtype=jnp.float32)
    weight = 0.1 * jax.random.normal(
        kw_, (out_channels, in_channels, kernel_size, kernel_size), dtype=jnp.float32)
    # nn.BatchNorm2d init is gamma=1, beta=0; use non-trivial values to exercise the affine.
    gamma = 1.0 + 0.1 * jax.random.normal(kg, (out_channels,), dtype=jnp.float32)
    beta = 0.1 * jax.random.normal(kb, (out_channels,), dtype=jnp.float32)

    # block_m=128 exercises the multi-tile two-pass BN path at this small demo size
    # (M = 2*16*16 = 512 -> 4 tiles); production default is block_m=512 (sweep 512-2048).
    out = conv_block_forward(x, weight, gamma, beta,
                             stride=stride, padding=padding, block_m=128)
    out = jax.block_until_ready(out)

    ref = ref_forward(x, weight, gamma, beta, stride=stride, padding=padding)
    assert out.shape == (N, out_channels, H, W), out.shape
    max_err = float(jnp.abs(out - ref).max())
    assert jnp.allclose(out, ref, atol=1e-3, rtol=1e-3), max_err

    print("KERNEL_OK")
</pallas_src>

<mosaic_0001>
module attributes {stable_mosaic.version = 11 : i64} {
  func.func @matmul_stats_kernel(%arg0: i32, %arg1: memref<128x36xbf16, #tpu.memory_space<vmem>>, %arg2: memref<36x128xbf16, #tpu.memory_space<vmem>>, %arg3: memref<128x128xf32, #tpu.memory_space<vmem>>, %arg4: memref<1x8x128xf32, #tpu.memory_space<vmem>>, %arg5: memref<1x8x128xf32, #tpu.memory_space<vmem>>) attributes {dimension_semantics = [#tpu.dimension_semantics<parallel>], iteration_bounds = array<i64: 4>, scalar_prefetch = 0 : i64, scratch_operands = 0 : i64, tpu.core_type = #tpu.core_type<tc>, window_params = [{transform_indices = @transform_0, window_bounds = array<i64: 128, 36>}, {pipeline_mode = #tpu.pipeline_mode<synchronous>, transform_indices = @transform_1, window_bounds = array<i64: 36, 128>}, {transform_indices = @transform_2, window_bounds = array<i64: 128, 128>}, {transform_indices = @transform_3, window_bounds = array<i64: 1, 8, 128>}, {transform_indices = @transform_4, window_bounds = array<i64: 1, 8, 128>}]} {
    %c0 = arith.constant 0 : index
    %c0_0 = arith.constant 0 : index
    %0 = vector.load %arg1[%c0, %c0_0] : memref<128x36xbf16, #tpu.memory_space<vmem>>, vector<128x36xbf16>
    %c0_1 = arith.constant 0 : index
    %c0_2 = arith.constant 0 : index
    %1 = vector.load %arg2[%c0_1, %c0_2] : memref<36x128xbf16, #tpu.memory_space<vmem>>, vector<36x128xbf16>
    %cst = arith.constant dense<0.000000e+00> : vector<128x128xf32>
    %2 = tpu.matmul %0, %1, %cst {dimension_numbers = #tpu.dot_dimension_numbers<[1], [0], [0], [1], [0, 0, 1, 1], [], []>} : vector<128x36xbf16>, vector<36x128xbf16>, vector<128x128xf32> -> vector<128x128xf32>
    %c0_3 = arith.constant 0 : index
    %c0_4 = arith.constant 0 : index
    %3 = vector.load %arg3[%c0_3, %c0_4] : memref<128x128xf32, #tpu.memory_space<vmem>>, vector<128x128xf32>
    tpu.vector_store %arg3[%c0_3, %c0_4], %2 {strides = array<i32>} : memref<128x128xf32, #tpu.memory_space<vmem>>, vector<128x128xf32>,
    %cst_5 = arith.constant dense<0.000000e+00> : vector<128xf32>
    %4 = vector.multi_reduction <add>, %2, %cst_5 [0] : vector<128x128xf32> to vector<128xf32>
    %5 = vector.shape_cast %4 : vector<128xf32> to vector<1x128xf32>
    %6 = arith.mulf %2, %2 : vector<128x128xf32>
    %cst_6 = arith.constant dense<0.000000e+00> : vector<128xf32>
    %7 = vector.multi_reduction <add>, %6, %cst_6 [0] : vector<128x128xf32> to vector<128xf32>
    %8 = vector.shape_cast %7 : vector<128xf32> to vector<1x128xf32>
    %9 = vector.shape_cast %5 : vector<1x128xf32> to vector<1x1x128xf32>
    %10 = vector.shape_cast %9 : vector<1x1x128xf32> to vector<1x1x128xf32>
    %11 = vector.broadcast %10 : vector<1x1x128xf32> to vector<1x8x128xf32>
    %c0_7 = arith.constant 0 : index
    %c0_8 = arith.constant 0 : index
    %c0_9 = arith.constant 0 : index
    %12 = vector.load %arg4[%c0_7, %c0_8, %c0_9] : memref<1x8x128xf32, #tpu.memory_space<vmem>>, vector<1x8x128xf32>
    tpu.vector_store %arg4[%c0_7, %c0_8, %c0_9], %11 {strides = array<i32>} : memref<1x8x128xf32, #tpu.memory_space<vmem>>, vector<1x8x128xf32>,
    %13 = vector.shape_cast %8 : vector<1x128xf32> to vector<1x1x128xf32>
    %14 = vector.shape_cast %13 : vector<1x1x128xf32> to vector<1x1x128xf32>
    %15 = vector.broadcast %14 : vector<1x1x128xf32> to vector<1x8x128xf32>
    %c0_10 = arith.constant 0 : index
    %c0_11 = arith.constant 0 : index
    %c0_12 = arith.constant 0 : index
    %16 = vector.load %arg5[%c0_10, %c0_11, %c0_12] : memref<1x8x128xf32, #tpu.memory_space<vmem>>, vector<1x8x128xf32>
    tpu.vector_store %arg5[%c0_10, %c0_11, %c0_12], %15 {strides = array<i32>} : memref<1x8x128xf32, #tpu.memory_space<vmem>>, vector<1x8x128xf32>,
    return
  }
  func.func @transform_0(%arg0: i32) -> (i32, i32) {
    %c0_i32 = arith.constant 0 : i32
    %c0_i32_0 = arith.constant 0 : i32
    return %arg0, %c0_i32 : i32, i32
  }
  func.func @transform_1(%arg0: i32) -> (i32, i32) {
    %c0_i32 = arith.constant 0 : i32
    %c0_i32_0 = arith.constant 0 : i32
    %c0_i32_1 = arith.constant 0 : i32
    return %c0_i32, %c0_i32_0 : i32, i32
  }
  func.func @transform_2(%arg0: i32) -> (i32, i32) {
    %c0_i32 = arith.constant 0 : i32
    %c0_i32_0 = arith.constant 0 : i32
    return %arg0, %c0_i32 : i32, i32
  }
  func.func @transform_3(%arg0: i32) -> (i32, i32, i32) {
    %c0_i32 = arith.constant 0 : i32
    %c0_i32_0 = arith.constant 0 : i32
    %c0_i32_1 = arith.constant 0 : i32
    return %arg0, %c0_i32, %c0_i32_0 : i32, i32, i32
  }
  func.func @transform_4(%arg0: i32) -> (i32, i32, i32) {
    %c0_i32 = arith.constant 0 : i32
    %c0_i32_0 = arith.constant 0 : i32
    %c0_i32_1 = arith.constant 0 : i32
    return %arg0, %c0_i32, %c0_i32_0 : i32, i32, i32
  }
}

module attributes {stable_mosaic.version = 11 : i64} {
  func.func @bn_relu_kernel(%arg0: i32, %arg1: memref<128x128xf32, #tpu.memory_space<vmem>>, %arg2: memref<1x128xf32, #tpu.memory_space<vmem>>, %arg3: memref<1x128xf32, #tpu.memory_space<vmem>>, %arg4: memref<128x128xf32, #tpu.memory_space<vmem>>) attributes {dimension_semantics = [#tpu.dimension_semantics<parallel>], iteration_bounds = array<i64: 4>, scalar_prefetch = 0 : i64, scratch_operands = 0 : i64, tpu.core_type = #tpu.core_type<tc>, window_params = [{transform_indices = @transform_0, window_bounds = array<i64: 128, 128>}, {pipeline_mode = #tpu.pipeline_mode<synchronous>, transform_indices = @transform_1, window_bounds = array<i64: 1, 128>}, {pipeline_mode = #tpu.pipeline_mode<synchronous>, transform_indices = @transform_2, window_bounds = array<i64: 1, 128>}, {transform_indices = @transform_3, window_bounds = array<i64: 128, 128>}]} {
    %c0 = arith.constant 0 : index
    %c0_0 = arith.constant 0 : index
    %0 = vector.load %arg1[%c0, %c0_0] : memref<128x128xf32, #tpu.memory_space<vmem>>, vector<128x128xf32>
    %c0_1 = arith.constant 0 : index
    %c0_2 = arith.constant 0 : index
    %1 = vector.load %arg2[%c0_1, %c0_2] : memref<1x128xf32, #tpu.memory_space<vmem>>, vector<1x128xf32>
    %2 = vector.broadcast %1 : vector<1x128xf32> to vector<128x128xf32>
    %3 = arith.mulf %0, %2 : vector<128x128xf32>
    %c0_3 = arith.constant 0 : index
    %c0_4 = arith.constant 0 : index
    %4 = vector.load %arg3[%c0_3, %c0_4] : memref<1x128xf32, #tpu.memory_space<vmem>>, vector<1x128xf32>
    %5 = vector.broadcast %4 : vector<1x128xf32> to vector<128x128xf32>
    %6 = arith.addf %3, %5 : vector<128x128xf32>
    %cst = arith.constant 0.000000e+00 : f32
    %7 = vector.broadcast %cst : f32 to vector<128x128xf32>
    %8 = arith.maximumf %6, %7 : vector<128x128xf32>
    %c0_5 = arith.constant 0 : index
    %c0_6 = arith.constant 0 : index
    %9 = vector.load %arg4[%c0_5, %c0_6] : memref<128x128xf32, #tpu.memory_space<vmem>>, vector<128x128xf32>
    tpu.vector_store %arg4[%c0_5, %c0_6], %8 {strides = array<i32>} : memref<128x128xf32, #tpu.memory_space<vmem>>, vector<128x128xf32>,
    return
  }
  func.func @transform_0(%arg0: i32) -> (i32, i32) {
    %c0_i32 = arith.constant 0 : i32
    %c0_i32_0 = arith.constant 0 : i32
    return %arg0, %c0_i32 : i32, i32
  }
  func.func @transform_1(%arg0: i32) -> (i32, i32) {
    %c0_i32 = arith.constant 0 : i32
    %c0_i32_0 = arith.constant 0 : i32
    %c0_i32_1 = arith.constant 0 : i32
    return %c0_i32, %c0_i32_0 : i32, i32
  }
  func.func @transform_2(%arg0: i32) -> (i32, i32) {
    %c0_i32 = arith.constant 0 : i32
    %c0_i32_0 = arith.constant 0 : i32
    %c0_i32_1 = arith.constant 0 : i32
    return %c0_i32, %c0_i32_0 : i32, i32
  }
  func.func @transform_3(%arg0: i32) -> (i32, i32) {
    %c0_i32 = arith.constant 0 : i32
    %c0_i32_0 = arith.constant 0 : i32
    return %arg0, %c0_i32 : i32, i32
  }
}

</mosaic_0001>

<bundles_post_ra>
// kernel: conv_block_forward.3
= control target key start
LH: loop header
LB: loop body
LE: loop exit
PB: predicated region body
PF: predicated region fallthrough
CT: control target
= control target key end

     0   :  { %s367_s12 = smov 0   ;;  %s444_s0 = inlined_call_operand.vmem [shape: f32[512,128], index: 0, kind: input, shape index: {}]   ;;  %s445_s1 = inlined_call_operand.vmem [shape: f32[1,128], index: 1, kind: input, shape index: {}]   ;;  %s446_s2 = inlined_call_operand.vmem [shape: f32[1,128], index: 2, kind: input, shape index: {}]   ;;  %s447_s3 = inlined_call_operand.vmem [shape: f32[512,128], index: 3, kind: output, shape index: {}]  }
   0x1 LB: > { %s318_s13 = sadd.s32 4294967295, %s345_s12   ;;  %p322_p0 = scmp.ge.s32.totalorder %s345_s12, 1  ;;  %s345_s12 = sphi %s367_s12, %s13_s12  }
   0x2   : > { %p138_p1 = scmp.lt.s32.totalorder %s345_s12, 5 }
   0x4   : > { %p139_p2 = pnand %p322_p0, %p138_p1 }
   0x5   : > { %s323_s14 = sshll.u32 (!%p139_p2), %s318_s13, 4 }
   0x6   : > { %142 = sbr.rel (%p139_p2) target bundleno = 37 (0x25), region = 32  ;;  %p163_p3 = scmp.lt.s32.totalorder (!%p139_p2), %s323_s14, 63 }
   0xb   : > { %s449_s14 = smov (!%p163_p3, %s323_s14), 63  ;;  %v337_v0 = vld [vmem:[%s445_s1] ss:$0 sm:$0xff] }
   0xc   : > { %s324_s17 = sshll.u32 %s449_s14, 3  ;;  %v386_v1 = vld [vmem:[%s446_s2] ss:$0 sm:$0xff] }
   0xd   : > { %s381_s20 = scalar_lea.vmem %s444_s0, %s324_s17  ;;  %s402_s25 = scalar_lea.vmem %s447_s3, %s324_s17 }
   0xe   : > { %v174_v2 = vld [vmem:[%s381_s20] sm:$0xff]  ;;  %v175_v3 = vld [vmem:[%s381_s20 + $0x8] sm:$0xff]  ;;  %v176_v4 = vld [vmem:[%s381_s20 + $0x10] sm:$0xff] }
   0xf   : > { %v194_v5 = vmul.f32 %v337_v0, %v174_v2  ;;  %v195_v6 = vmul.f32 %v337_v0, %v175_v3  ;;  %v196_v7 = vmul.f32 %v337_v0, %v176_v4  ;;  %v177_v8 = vld [vmem:[%s381_s20 + $0x18] sm:$0xff]  ;;  %v178_v9 = vld [vmem:[%s381_s20 + $0x20] sm:$0xff]  ;;  %v179_v10 = vld [vmem:[%s381_s20 + $0x28] sm:$0xff] }
  0x10   : > { %v197_v11 = vmul.f32 %v337_v0, %v177_v8  ;;  %v198_v12 = vmul.f32 %v337_v0, %v178_v9  ;;  %v199_v13 = vmul.f32 %v337_v0, %v179_v10  ;;  %v180_v14 = vld [vmem:[%s381_s20 + $0x30] sm:$0xff]  ;;  %v181_v15 = vld [vmem:[%s381_s20 + $0x38] sm:$0xff]  ;;  %v182_v24 = vld [vmem:[%s381_s20 + $0x40] sm:$0xff] }
  0x11   : > { %v214_v16 = vadd.f32 %v386_v1, %v194_v5  ;;  %v215_v17 = vadd.f32 %v386_v1, %v195_v6  ;;  %v216_v18 = vadd.f32 %v386_v1, %v196_v7  ;;  %v200_v19 = vmul.f32 %v337_v0, %v180_v14  ;;  %v183_v25 = vld [vmem:[%s381_s20 + $0x48] sm:$0xff]  ;;  %v184_v26 = vld [vmem:[%s381_s20 + $0x50] sm:$0xff]  ;;  %v185_v31 = vld [vmem:[%s381_s20 + $0x58] sm:$0xff] }
  0x12   : > { %v217_v20 = vadd.f32 %v386_v1, %v197_v11  ;;  %v218_v21 = vadd.f32 %v386_v1, %v198_v12  ;;  %v219_v22 = vadd.f32 %v386_v1, %v199_v13  ;;  %v201_v23 = vmul.f32 %v337_v0, %v181_v15  ;;  %v186_v32 = vld [vmem:[%s381_s20 + $0x60] sm:$0xff]  ;;  %v187_v33 = vld [vmem:[%s381_s20 + $0x68] sm:$0xff]  ;;  %v188_v37 = vld [vmem:[%s381_s20 + $0x70] sm:$0xff] }
  0x13   : > { %v230_v27 = vmax.f32 %v214_v16, 0.0  ;;  %v231_v28 = vmax.f32 %v215_v17, 0.0  ;;  %v232_v29 = vmax.f32 %v216_v18, 0.0  ;;  %v220_v30 = vadd.f32 %v386_v1, %v200_v19  ;;  %v189_v42 = vld [vmem:[%s381_s20 + $0x78] sm:$0xff] }
  0x14   : > { %v233_v34 = vmax.f32 %v217_v20, 0.0  ;;  %v234_v35 = vmax.f32 %v218_v21, 0.0  ;;  %v221_v36 = vadd.f32 %v386_v1, %v201_v23  ;;  %v235_v38 = vmax.f32 %v219_v22, 0.0 }
  0x15   : > { %246 = vst [vmem:[%s402_s25] sm:$0xff] %v230_v27  ;;  %v202_v39 = vmul.f32 %v337_v0, %v182_v24  ;;  %v203_v40 = vmul.f32 %v337_v0, %v183_v25  ;;  %v204_v41 = vmul.f32 %v337_v0, %v184_v26  ;;  %v236_v43 = vmax.f32 %v220_v30, 0.0 }
  0x16   : > { %247 = vst [vmem:[%s402_s25 + $0x8] sm:$0xff] %v231_v28  ;;  %v205_v44 = vmul.f32 %v337_v0, %v185_v31  ;;  %v206_v45 = vmul.f32 %v337_v0, %v186_v32  ;;  %v207_v46 = vmul.f32 %v337_v0, %v187_v33  ;;  %v208_v50 = vmul.f32 %v337_v0, %v188_v37 }
  0x17   : > { %248 = vst [vmem:[%s402_s25 + $0x10] sm:$0xff] %v232_v29  ;;  %v222_v47 = vadd.f32 %v386_v1, %v202_v39  ;;  %v223_v48 = vadd.f32 %v386_v1, %v203_v40  ;;  %v224_v49 = vadd.f32 %v386_v1, %v204_v41  ;;  %v237_v51 = vmax.f32 %v221_v36, 0.0 }
  0x18   : > { %249 = vst [vmem:[%s402_s25 + $0x18] sm:$0xff] %v233_v34  ;;  %v225_v52 = vadd.f32 %v386_v1, %v205_v44  ;;  %v209_v53 = vmul.f32 %v337_v0, %v189_v42  ;;  %v226_v55 = vadd.f32 %v386_v1, %v206_v45  ;;  %v227_v57 = vadd.f32 %v386_v1, %v207_v46 }
  0x19   : > { %250 = vst [vmem:[%s402_s25 + $0x20] sm:$0xff] %v234_v35  ;;  %v238_v54 = vmax.f32 %v222_v47, 0.0  ;;  %v239_v56 = vmax.f32 %v223_v48, 0.0  ;;  %v240_v58 = vmax.f32 %v224_v49, 0.0  ;;  %v228_v59 = vadd.f32 %v386_v1, %v208_v50 }
  0x1a   : > { %251 = vst [vmem:[%s402_s25 + $0x28] sm:$0xff] %v235_v38  ;;  %v241_v60 = vmax.f32 %v225_v52, 0.0  ;;  %v229_v61 = vadd.f32 %v386_v1, %v209_v53  ;;  %v242_v62 = vmax.f32 %v226_v55, 0.0  ;;  %v243_v63 = vmax.f32 %v227_v57, 0.0 }
  0x1b   : > { %252 = vst [vmem:[%s402_s25 + $0x30] sm:$0xff] %v236_v43  ;;  %v244_v0 = vmax.f32 %v228_v59, 0.0 }
  0x1c   : > { %253 = vst [vmem:[%s402_s25 + $0x38] sm:$0xff] %v237_v51  ;;  %v245_v2 = vmax.f32 %v229_v61, 0.0 }
  0x1d   : > { %254 = vst [vmem:[%s402_s25 + $0x40] sm:$0xff] %v238_v54 }
  0x1e   : > { %255 = vst [vmem:[%s402_s25 + $0x48] sm:$0xff] %v239_v56 }
  0x1f   : > { %256 = vst [vmem:[%s402_s25 + $0x50] sm:$0xff] %v240_v58 }
  0x20   : > { %257 = vst [vmem:[%s402_s25 + $0x58] sm:$0xff] %v241_v60 }
  0x21   : > { %258 = vst [vmem:[%s402_s25 + $0x60] sm:$0xff] %v242_v62 }
  0x22   : > { %259 = vst [vmem:[%s402_s25 + $0x68] sm:$0xff] %v243_v63 }
  0x23   : > { %260 = vst [vmem:[%s402_s25 + $0x70] sm:$0xff] %v244_v0 }
  0x24   : > { %261 = vst [vmem:[%s402_s25 + $0x78] sm:$0xff] %v245_v2 }
  0x25 PF: > { %s13_s12 = sadd.s32 1, %s345_s12  }
  0x26   : > { %p10_p4 = scmp.ge.s32.totalorder %s13_s12, 6  }
  0x28   :  { %12 = sbr.rel (!%p10_p4) target bundleno = 1 (0x1), region = 62 }

// kernel: conv_block_forward.2
= control target key start
LH: loop header
LB: loop body
LE: loop exit
PB: predicated region body
PF: predicated region fallthrough
CT: control target
= control target key end

     0   :  { %s692_s15 = smov 0   ;;  %s759_s0 = inlined_call_operand.vmem [shape: bf16[512,36], index: 0, kind: input, shape index: {}]   ;;  %s760_s1 = inlined_call_operand.vmem [shape: bf16[36,128], index: 1, kind: input, shape index: {}]   ;;  %s761_s2 = inlined_call_operand.vmem [shape: f32[512,128], index: 2, kind: output, shape index: {0}]   ;;  %s762_s3 = inlined_call_operand.vmem [shape: f32[4,8,128], index: 3, kind: output, shape index: {1}]   ;;  %s763_s4 = inlined_call_operand.vmem [shape: f32[4,8,128], index: 4, kind: output, shape index: {2}]  }
   0x1 LB: > { %s698_s16 = sadd.s32 4294967295, %s665_s15   ;;  %p575_p0 = scmp.ge.s32.totalorder %s665_s15, 1  ;;  %s665_s15 = sphi %s692_s15, %s15_s15  }
   0x2   : > { %p168_p1 = scmp.lt.s32.totalorder %s665_s15, 5 }
   0x4   : > { %p169_p2 = pnand %p575_p0, %p168_p1 }
   0x5   : > { %s576_s19 = sshll.u32 (!%p169_p2), %s698_s16, 4  ;;  %p214_p4 = scmp.lt.s32.totalorder (!%p169_p2), %s698_s16, 3 }
   0x6   : > { %172 = sbr.rel (%p169_p2) target bundleno = 219 (0xdb), region = 28  ;;  %p203_p3 = scmp.lt.s32.totalorder (!%p169_p2), %s576_s19, 63 }
   0xb   : > { %v243_v0 = vld [vmem:[%s760_s1 + $0x10] sm:$0x3]  ;;  %vm324_vm0 = vcmask 1041408   ;;  %s765_s19 = smov (!%p203_p3, %s576_s19), 63  ;;  %v641_v4 = vld [vmem:[%s760_s1 + $0x8] sm:$0xff]  ;;  %v640_v5 = vld [vmem:[%s760_s1] sm:$0xff] }
   0xc   : > { %v293_v1 = vunpack.c.l.b16 %v243_v0  ;;  %s577_s22 = sshll.u32 %s765_s19, 2  ;;  %vm299_vm1 = vcmask 293888   ;;  %s579_s28 = sshll.u32 %s765_s19, 3 }
   0xd   : > { %s206_s27 = scalar_lea.vmem %s759_s0, %s577_s22  ;;  %s730_s5 = scalar_lea.vmem %s761_s2, %s579_s28 }
   0xe   : > { %v296_v2 = vpack.c.b16 %v293_v1, %v293_v1  ;;  %v632_v6 = vld [vmem:[%s206_s27] sm:$0xff]  ;;  %v634_v7 = vld [vmem:[%s206_s27 + $0x10] sm:$0xff]  ;;  %v633_v10 = vld [vmem:[%s206_s27 + $0x8] sm:$0xff]  ;;  %s767_s16 = smov (!%p214_p4, %s698_s16), 3 }
   0xf   : > { %v636_v8 = vld [vmem:[%s206_s27 + $0x20] sm:$0xff]  ;;  %v638_v9 = vld [vmem:[%s206_s27 + $0x30] sm:$0xff]  ;;  %v635_v11 = vld [vmem:[%s206_s27 + $0x18] sm:$0xff]  ;;  %s580_s6 = sshll.u32 %s767_s16, 3 }
  0x10   : > { %v326_v3 = vsel %vm324_vm0, %v296_v2, 0  ;;  %v637_v12 = vld [vmem:[%s206_s27 + $0x28] sm:$0xff]  ;;  %v639_v13 = vld [vmem:[%s206_s27 + $0x38] sm:$0xff]  ;;  %s217_s9 = scalar_lea.vmem %s762_s3, %s580_s6  ;;  %s221_s12 = scalar_lea.vmem %s763_s4, %s580_s6 }
  0x11   : > { %333 = vmatpush.bf16.msra.mxu0 %v326_v3  ;;  %642 = vmatpush.bf16.msra.mxu1 %v326_v3 }
  0x12   : > { %643 = vmatpush.bf16.msra.mxu2 %v326_v3  ;;  %644 = vmatpush.bf16.msra.mxu3 %v326_v3 }
  0x15   : > { %334 = vmatpush.bf16.msra.mxu0 %v641_v4  ;;  %645 = vmatpush.bf16.msra.mxu1 %v641_v4 }
  0x16   : > { %646 = vmatpush.bf16.msra.mxu2 %v641_v4  ;;  %647 = vmatpush.bf16.msra.mxu3 %v641_v4 }
  0x19   : > { %335 = vmatpush.bf16.msra.mxu0 %v640_v5  ;;  %648 = vmatpush.bf16.msra.mxu1 %v640_v5 }
  0x1a   : > { %649 = vmatpush.bf16.msra.mxu2 %v640_v5  ;;  %650 = vmatpush.bf16.msra.mxu3 %v640_v5 }
  0x1c   : > { %622 = vmatmul.msk.bf16.vlgmr.msra.gmra.mxu0 %vm299_vm1, %v632_v6  ;;  %624 = vmatmul.msk.bf16.vlgmr.msra.gmra.mxu1 %vm299_vm1, %v634_v7 }
  0x1d   : > { %626 = vmatmul.msk.bf16.vlgmr.msra.gmra.mxu2 %vm299_vm1, %v636_v8  ;;  %628 = vmatmul.msk.bf16.vlgmr.msra.gmra.mxu3 %vm299_vm1, %v638_v9 }
  0x2c   : > { %623 = vmatmul.msk.bf16.gmra.mxu0 %vm299_vm1, %v633_v10  ;;  %625 = vmatmul.msk.bf16.gmra.mxu1 %vm299_vm1, %v635_v11 }
  0x2d   : > { %627 = vmatmul.msk.bf16.gmra.mxu2 %vm299_vm1, %v637_v12  ;;  %629 = vmatmul.msk.bf16.gmra.mxu3 %vm299_vm1, %v639_v13 }
  0x99   : > { %v337_v14 = vpop.f32.mrf.mxu0  ;;  %v347_v15 = vpop.f32.mrf.mxu1 }
  0x9a   : > { %377 = vst [vmem:[%s730_s5] sm:$0xff] %v337_v14  ;;  %v414_v25 = vmul.f32 %v337_v14, %v337_v14  ;;  %v418_v37 = vmul.f32 %v347_v15, %v347_v15 }
  0x9b   : > { %381 = vst [vmem:[%s730_s5 + $0x20] sm:$0xff] %v347_v15 }
  0xa0   : > { %v357_v16 = vpop.f32.mrf.mxu2  ;;  %v367_v17 = vpop.f32.mrf.mxu3 }
  0xa1   : > { %v339_v18 = vpop.f32.mrf.mxu0  ;;  %v349_v19 = vpop.f32.mrf.mxu1  ;;  %385 = vst [vmem:[%s730_s5 + $0x40] sm:$0xff] %v357_v16  ;;  %v422_v51 = vmul.f32 %v357_v16, %v357_v16  ;;  %v426_v63 = vmul.f32 %v367_v17, %v367_v17 }
  0xa2   : > { %378 = vst [vmem:[%s730_s5 + $0x8] sm:$0xff] %v339_v18  ;;  %v415_v24 = vmul.f32 %v339_v18, %v339_v18  ;;  %v393_v26 = vadd.f32 %v339_v18, %v337_v14  ;;  %v419_v40 = vmul.f32 %v349_v19, %v349_v19 }
  0xa3   : > { %382 = vst [vmem:[%s730_s5 + $0x28] sm:$0xff] %v349_v19 }
  0xa4   : > { %389 = vst [vmem:[%s730_s5 + $0x60] sm:$0xff] %v367_v17  ;;  %v430_v28 = vadd.f32 %v415_v24, %v414_v25 }
  0xa8   : > { %v359_v20 = vpop.f32.mrf.mxu2  ;;  %v369_v21 = vpop.f32.mrf.mxu3 }
  0xa9   : > { %v342_v22 = vpop.f32.mrf.mxu0  ;;  %v352_v23 = vpop.f32.mrf.mxu1  ;;  %386 = vst [vmem:[%s730_s5 + $0x48] sm:$0xff] %v359_v20  ;;  %v423_v54 = vmul.f32 %v359_v20, %v359_v20  ;;  %v427_v2 = vmul.f32 %v369_v21, %v369_v21 }
  0xaa   : > { %379 = vst [vmem:[%s730_s5 + $0x10] sm:$0xff] %v342_v22  ;;  %v416_v27 = vmul.f32 %v342_v22, %v342_v22  ;;  %v394_v29 = vadd.f32 %v393_v26, %v342_v22  ;;  %v420_v43 = vmul.f32 %v352_v23, %v352_v23 }
  0xab   : > { %383 = vst [vmem:[%s730_s5 + $0x30] sm:$0xff] %v352_v23 }
  0xac   : > { %390 = vst [vmem:[%s730_s5 + $0x68] sm:$0xff] %v369_v21  ;;  %v431_v34 = vadd.f32 %v430_v28, %v416_v27 }
  0xb0   : > { %v362_v30 = vpop.f32.mrf.mxu2  ;;  %v372_v31 = vpop.f32.mrf.mxu3 }
  0xb1   : > { %v344_v32 = vpop.f32.mrf.mxu0  ;;  %v354_v33 = vpop.f32.mrf.mxu1  ;;  %387 = vst [vmem:[%s730_s5 + $0x50] sm:$0xff] %v362_v30  ;;  %v424_v58 = vmul.f32 %v362_v30, %v362_v30  ;;  %v428_v6 = vmul.f32 %v372_v31, %v372_v31 }
  0xb2   : > { %380 = vst [vmem:[%s730_s5 + $0x18] sm:$0xff] %v344_v32  ;;  %v395_v35 = vadd.f32 %v394_v29, %v344_v32  ;;  %v417_v36 = vmul.f32 %v344_v32, %v344_v32  ;;  %v421_v49 = vmul.f32 %v354_v33, %v354_v33 }
  0xb3   : > { %384 = vst [vmem:[%s730_s5 + $0x38] sm:$0xff] %v354_v33 }
  0xb4   : > { %v396_v38 = vadd.f32 %v395_v35, %v347_v15  ;;  %v432_v39 = vadd.f32 %v431_v34, %v417_v36  ;;  %391 = vst [vmem:[%s730_s5 + $0x70] sm:$0xff] %v372_v31 }
  0xb6   : > { %v433_v41 = vadd.f32 %v432_v39, %v418_v37  ;;  %v397_v42 = vadd.f32 %v396_v38, %v349_v19 }
  0xb8   : > { %v398_v44 = vadd.f32 %v397_v42, %v352_v23  ;;  %v434_v45 = vadd.f32 %v433_v41, %v419_v40  ;;  %v364_v46 = vpop.f32.mrf.mxu2  ;;  %v374_v47 = vpop.f32.mrf.mxu3 }
  0xb9   : > { %388 = vst [vmem:[%s730_s5 + $0x58] sm:$0xff] %v364_v46  ;;  %v425_v62 = vmul.f32 %v364_v46, %v364_v46  ;;  %v429_v10 = vmul.f32 %v374_v47, %v374_v47 }
  0xba   : > { %v399_v48 = vadd.f32 %v398_v44, %v354_v33  ;;  %v435_v50 = vadd.f32 %v434_v45, %v420_v43  ;;  %392 = vst [vmem:[%s730_s5 + $0x78] sm:$0xff] %v374_v47 }
  0xbc   : > { %v400_v52 = vadd.f32 %v399_v48, %v357_v16  ;;  %v436_v53 = vadd.f32 %v435_v50, %v421_v49 }
  0xbe   : > { %v437_v55 = vadd.f32 %v436_v53, %v422_v51  ;;  %v401_v56 = vadd.f32 %v400_v52, %v359_v20 }
  0xc0   : > { %v402_v57 = vadd.f32 %v401_v56, %v362_v30  ;;  %v438_v59 = vadd.f32 %v437_v55, %v423_v54 }
  0xc2   : > { %v439_v60 = vadd.f32 %v438_v59, %v424_v58  ;;  %v403_v61 = vadd.f32 %v402_v57, %v364_v46 }
  0xc4   : > { %v404_v0 = vadd.f32 %v403_v61, %v367_v17  ;;  %v440_v1 = vadd.f32 %v439_v60, %v425_v62 }
  0xc6   : > { %v441_v3 = vadd.f32 %v440_v1, %v426_v63  ;;  %v405_v4 = vadd.f32 %v404_v0, %v369_v21 }
  0xc8   : > { %v406_v5 = vadd.f32 %v405_v4, %v372_v31  ;;  %v442_v7 = vadd.f32 %v441_v3, %v427_v2 }
  0xca   : > { %v443_v8 = vadd.f32 %v442_v7, %v428_v6  ;;  %v407_v9 = vadd.f32 %v406_v5, %v374_v47 }
  0xcc   : > { %v408_v11 = vrot.slane %v407_v9, 4  ;;  %v444_v12 = vadd.f32 %v443_v8, %v429_v10 }
  0xce   : > { %v409_v13 = vadd.f32 %v408_v11, %v407_v9  ;;  %v445_v14 = vrot.slane %v444_v12, 4 }
  0xd0   : > { %v410_v15 = vrot.slane %v409_v13, 2  ;;  %v446_v16 = vadd.f32 %v445_v14, %v444_v12 }
  0xd2   : > { %v411_v17 = vadd.f32 %v410_v15, %v409_v13  ;;  %v447_v18 = vrot.slane %v446_v16, 2 }
  0xd4   : > { %v412_v19 = vrot.slane %v411_v17, 1  ;;  %v448_v20 = vadd.f32 %v447_v18, %v446_v16 }
  0xd6   : > { %v413_v21 = vadd.f32 %v412_v19, %v411_v17  ;;  %v449_v22 = vrot.slane %v448_v20, 1 }
  0xd8   : > { %v450_v23 = vadd.f32 %v449_v22, %v448_v20  ;;  %451 = vst [vmem:[%s217_s9] sm:$0xff] %v413_v21 }
  0xda   : > { %452 = vst [vmem:[%s221_s12] sm:$0xff] %v450_v23 }
  0xdb PF: > { %s15_s15 = sadd.s32 1, %s665_s15  }
  0xdc   : > { %p12_p5 = scmp.ge.s32.totalorder %s15_s15, 6  }
  0xde   :  { %14 = sbr.rel (!%p12_p5) target bundleno = 1 (0x1), region = 82 }

</bundles_post_ra>
